<compile_context>
chip_gen: v5e
topology: v5e:2x2
jax: 0.10.0
libtpu: 0.0.40
codegen_flags: <defaults>
</compile_context>

<pallas_src>
import functools

import jax
import jax.numpy as jnp
from jax.experimental import pallas as pl
from jax.experimental.pallas import tpu as pltpu

EPS = 1e-12  # matches torch.nn.functional.normalize default eps
_MAX_TILE_ROWS = 2048  # diminishing returns past ~1-2k rows


def _l2_normalize_kernel(x_ref, o_ref):
    # x_ref / o_ref: (TM, D) tile in VMEM.
    x = x_ref[...]
    xf = x.astype(jnp.float32)
    # f32 accumulation of the squared sum (slightly more accurate than the
    # native-dtype PyTorch bf16 path; benign).
    sq_sum = jnp.sum(xf * xf, axis=-1, keepdims=True)            # (TM, 1) f32
    # rsqrt(max(s, eps^2)) == 1 / max(sqrt(s), eps)  (sqrt is monotone); EUP op.
    inv = jax.lax.rsqrt(jnp.maximum(sq_sum, EPS * EPS))
    # Final scale in the input dtype — halves the f32 VMEM/vreg footprint for
    # bf16 inputs; identical math for f32 inputs.
    o_ref[...] = (x * inv.astype(x.dtype)).astype(o_ref.dtype)


@functools.lru_cache(maxsize=None)
def _vmem_capacity_bytes() -> int:
    """Physical VMEM capacity of the local TPU (conservative fallback)."""
    try:
        info = pltpu.get_tpu_info()
        cap = int(getattr(info, "vmem_capacity_bytes", 0))
        if cap > 0:
            return cap
    except Exception:
        pass
    return 64 * 1024 * 1024  # conservative: v7x-sized VMEM


@functools.lru_cache(maxsize=None)
def _num_tensorcores() -> int:
    """TensorCores per chip (2 on v7x, 1 on v5e/v6e)."""
    try:
        dev = jax.devices()[0]
        nc = getattr(dev, "num_cores", None)
        if isinstance(nc, int) and nc > 0:
            return nc
        kind = str(getattr(dev, "device_kind", "")).lower()
        if "v7" in kind or "7x" in kind:
            return 2
    except Exception:
        pass
    return 1


def _choose_tile_rows(n: int, d: int, dtype, vmem_cap: int, num_cores: int) -> int:
    itemsize = jnp.dtype(dtype).itemsize
    sublane = {4: 8, 2: 16, 1: 32}.get(itemsize, 8)

    # Per-buffer VMEM budget: smaller on 64 MiB-VMEM chips (v7x); shrink
    # further for sub-32-bit inputs to cover the in-kernel f32 reduction temps.
    per_buffer = 4 * 1024 * 1024 if vmem_cap <= 64 * 1024 * 1024 else 8 * 1024 * 1024
    if itemsize < 4:
        per_buffer = (per_buffer * itemsize) // 4

    tm = per_buffer // max(1, d * itemsize)
    tm = max(sublane, (tm // sublane) * sublane)
    tm = min(tm, _MAX_TILE_ROWS)

    # Never larger than the (sublane-rounded) number of rows.
    n_rounded = pl.cdiv(n, sublane) * sublane
    tm = min(tm, n_rounded)

    # Only on 2-TensorCore chips (v7x): prefer >= 4 grid steps so the
    # "parallel" row axis load-balances across both cores.  Per-step overhead
    # (~0.35 us) is negligible vs. a multi-MiB tile's DMA time.  Single-core
    # chips (v5e/v6e) keep the single big tile — splitting buys nothing there.
    if num_cores >= 2:
        target_steps = 4 if n_rounded >= 4 * sublane else 2
        if n_rounded >= target_steps * sublane:
            cap = pl.cdiv(pl.cdiv(n_rounded, target_steps), sublane) * sublane
            tm = min(tm, cap)

    return max(tm, sublane)


def normalize(x: jax.Array, p: int = 2) -> jax.Array:
    """L_p normalize along dim=1 of a 2D (N, D) array (p=2 hot path only)."""
    assert p == 2, "only p=2 implemented (module default)"
    # TODO(synk): general p != 2 path not implemented in-kernel.
    N, D = x.shape
    itemsize = jnp.dtype(x.dtype).itemsize

    vmem_cap = _vmem_capacity_bytes()
    num_cores = _num_tensorcores()
    tm = _choose_tile_rows(N, D, x.dtype, vmem_cap, num_cores)

    # No wrapper-side padding / slicing: the ragged last tile is a partial
    # block (row-local math, masked OOB stores), so no extra HBM passes.
    grid = (pl.cdiv(N, tm),)

    # VMEM: in + out, each double-buffered (4 tiles) + 50% headroom, plus the
    # f32 reduction temporaries for sub-32-bit inputs.  Cap at ~0.75x of the
    # chip's physical VMEM (generation-aware; safe on v7x's 64 MiB).
    tile_bytes = tm * D * itemsize
    f32_temp_bytes = tm * D * 4 if itemsize < 4 else 0
    vmem_limit = int(4 * tile_bytes * 1.5) + 2 * f32_temp_bytes + (1 << 20)
    vmem_limit = max(vmem_limit, 32 * 1024 * 1024)
    vmem_limit = min(vmem_limit, int(0.75 * vmem_cap))

    return pl.pallas_call(
        _l2_normalize_kernel,
        out_shape=jax.ShapeDtypeStruct((N, D), x.dtype),
        grid_spec=pltpu.PrefetchScalarGridSpec(
            num_scalar_prefetch=0,
            grid=grid,
            in_specs=[pl.BlockSpec((tm, D), lambda i: (i, 0))],
            out_specs=pl.BlockSpec((tm, D), lambda i: (i, 0)),
        ),
        compiler_params=pltpu.CompilerParams(
            dimension_semantics=("parallel",),
            vmem_limit_bytes=vmem_limit,
        ),
    )(x)


if __name__ == "__main__":
    key = jax.random.PRNGKey(0)
    # Small embedding-like input: batch=16, feature dim=128 (dim=1 normalized).
    x = jax.random.normal(key, (16, 128), dtype=jnp.float32)

    y = normalize(x, p=2)
    y = jax.block_until_ready(y)

    # Reference check in plain JAX (mirrors F.normalize semantics).
    norm = jnp.sqrt(jnp.sum(x * x, axis=1, keepdims=True))
    y_ref = x / jnp.maximum(norm, EPS)
    assert jnp.allclose(y, y_ref, atol=1e-5, rtol=1e-5), "mismatch vs reference"

    # Non-tile-aligned batch exercises the partial-block (no-pad) path.
    x2 = jax.random.normal(jax.random.PRNGKey(1), (13, 128), dtype=jnp.float32)
    y2 = jax.block_until_ready(normalize(x2, p=2))
    norm2 = jnp.sqrt(jnp.sum(x2 * x2, axis=1, keepdims=True))
    y2_ref = x2 / jnp.maximum(norm2, EPS)
    assert jnp.allclose(y2, y2_ref, atol=1e-5, rtol=1e-5), "mismatch vs reference (partial block)"

    print("KERNEL_OK")
</pallas_src>

<mosaic_0001>
module attributes {stable_mosaic.version = 11 : i64} {
  func.func @_l2_normalize_kernel(%arg0: i32, %arg1: memref<16x128xf32, #tpu.memory_space<vmem>>, %arg2: memref<16x128xf32, #tpu.memory_space<vmem>>) attributes {dimension_semantics = [#tpu.dimension_semantics<parallel>], iteration_bounds = array<i64: 1>, scalar_prefetch = 0 : i64, scratch_operands = 0 : i64, tpu.core_type = #tpu.core_type<tc>, window_params = [{transform_indices = @transform_0, window_bounds = array<i64: 16, 128>}, {transform_indices = @transform_1, window_bounds = array<i64: 16, 128>}]} {
    %c0 = arith.constant 0 : index
    %c0_0 = arith.constant 0 : index
    %0 = vector.load %arg1[%c0, %c0_0] : memref<16x128xf32, #tpu.memory_space<vmem>>, vector<16x128xf32>
    %1 = arith.mulf %0, %0 : vector<16x128xf32>
    %cst = arith.constant dense<0.000000e+00> : vector<16xf32>
    %2 = vector.multi_reduction <add>, %1, %cst [1] : vector<16x128xf32> to vector<16xf32>
    %3 = vector.shape_cast %2 : vector<16xf32> to vector<16x1xf32>
    %cst_1 = arith.constant 1.000000e-24 : f32
    %4 = vector.broadcast %cst_1 : f32 to vector<16x1xf32>
    %5 = arith.maximumf %3, %4 : vector<16x1xf32>
    %6 = math.rsqrt %5 : vector<16x1xf32>
    %7 = vector.broadcast %6 : vector<16x1xf32> to vector<16x128xf32>
    %8 = arith.mulf %0, %7 : vector<16x128xf32>
    %c0_2 = arith.constant 0 : index
    %c0_3 = arith.constant 0 : index
    %9 = vector.load %arg2[%c0_2, %c0_3] : memref<16x128xf32, #tpu.memory_space<vmem>>, vector<16x128xf32>
    tpu.vector_store %arg2[%c0_2, %c0_3], %8 {strides = array<i32>} : memref<16x128xf32, #tpu.memory_space<vmem>>, vector<16x128xf32>,
    return
  }
  func.func @transform_0(%arg0: i32) -> (i32, i32) {
    %c0_i32 = arith.constant 0 : i32
    %c0_i32_0 = arith.constant 0 : i32
    return %arg0, %c0_i32 : i32, i32
  }
  func.func @transform_1(%arg0: i32) -> (i32, i32) {
    %c0_i32 = arith.constant 0 : i32
    %c0_i32_0 = arith.constant 0 : i32
    return %arg0, %c0_i32 : i32, i32
  }
}

</mosaic_0001>

<bundles_post_ra>
// kernel: tpu_custom_call.1
= control target key start
LH: loop header
LB: loop body
LE: loop exit
PB: predicated region body
PF: predicated region fallthrough
CT: control target
= control target key end

     0   :  { %6 = vsyncpa [#allocation3], 0  ;;  %s164_s0 = inlined_call_operand.hbm [shape: f32[16,128], index: 0, kind: input, shape index: {}]   ;;  %s165_s1 = inlined_call_operand.hbm [shape: f32[16,128], index: 1, kind: output, shape index: {}]  }
   0x1   :  { %7 = vsyncpa [#allocation4], 0  ;;  %s12_s8 = sshll.u32 %s164_s0, 4  ;;  %s138_s9 = smov [#allocation2]   ;;  %s13_s8 = int_to_ptr.hbm [resolvable:$true] %s12_s8 }
   0x2   :  { %s14_s10 = sshll.u32 %s138_s9, 4  ;;  %s139_s11 = smov 128   ;;  %s15_s10 = int_to_ptr.vmem [resolvable:$true] %s14_s10 }
   0x3   :  { %s140_s12 = smov 8  }
   0x4   :  { %20 = dma.hbm_to_vmem [thread:$0]  %s13_s8, 256, %s15_s10, [#allocation3], %s139_s11, %s139_s11, %s140_s12  }
   0x5   :  { %134 = dma.done.wait [#allocation3], 256  }
   0x6   :  { %135 = vsyncadd [#allocation3], 4294967040  ;;  %v25_v0 = vld [vmem:[#allocation2] sm:$0xff]  ;;  %v26_v2 = vld [vmem:[#allocation2 + $0x8] sm:$0xff]  ;;  %s141_s0 = smov [#allocation5]   ;;  %s65_s16 = sshll.u32 %s165_s1, 4  ;;  %s66_s16 = int_to_ptr.hbm [resolvable:$true] %s65_s16 }
   0x7   :  { %v27_v1 = vmul.f32 %v25_v0, %v25_v0  ;;  %v28_v3 = vmul.f32 %v26_v2, %v26_v2  ;;  %s63_s13 = sshll.u32 %s141_s0, 4  ;;  %s64_s13 = int_to_ptr.vmem [resolvable:$true] %s63_s13 }
   0x9   :  { %29 = vadd.xlane.f32.xlu0 %v27_v1 }
  0x11   :  { %31 = vadd.xlane.f32.xlu0 %v28_v3 }
  0x7c   :  { %v30_v4 = vpop.xlane.xlu0 %29 }
  0x7d   :  { %v33_v5 = vmax.f32 %v30_v4, 1e-24 }
  0x7f   :  { %82 = vrsqrt.f32 %v33_v5  ;;  %vm41_vm1 = vweird.f32 %v33_v5 }
  0x84   :  { %v32_v6 = vpop.xlane.xlu0 %31 }
  0x85   :  { %v83_v7 = vpop.eup %82  ;;  %v34_v8 = vmax.f32 %v32_v6, 1e-24 }
  0x86   :  { %v36_v9 = vmul.f32 %v83_v7, %v33_v5  ;;  %vm42_vm0 = vweird.f32 %v83_v7 }
  0x87   :  { %84 = vrsqrt.f32 %v34_v8  ;;  %vm43_vm2 = vmor %vm41_vm1, %vm42_vm0  ;;  %vm51_vm4 = vweird.f32 %v34_v8 }
  0x88   :  { %v37_v10 = vmul.f32 %v83_v7, %v36_v9 }
  0x8a   :  { %v38_v11 = vmul.f32 0.5, %v37_v10 }
  0x8c   :  { %v39_v12 = vsub.f32 1.5, %v38_v11 }
  0x8d   :  { %v85_v13 = vpop.eup %84 }
  0x8e   :  { %v40_v14 = vmul.f32 %v83_v7, %v39_v12  ;;  %v46_v15 = vmul.f32 %v85_v13, %v34_v8  ;;  %vm52_vm3 = vweird.f32 %v85_v13 }
  0x8f   :  { %vm53_vm5 = vmor %vm51_vm4, %vm52_vm3 }
  0x90   :  { %v44_v16 = vsel %vm43_vm2, %v83_v7, %v40_v14  ;;  %v47_v17 = vmul.f32 %v85_v13, %v46_v15 }
  0x91   :  { %v55_v18 = vmul.f32 %v44_v16, %v25_v0 }
  0x92   :  { %v48_v19 = vmul.f32 0.5, %v47_v17 }
  0x93   :  { %57 = vst [vmem:[#allocation5] sm:$0xff] %v55_v18 }
  0x94   :  { %v49_v20 = vsub.f32 1.5, %v48_v19 }
  0x96   :  { %v50_v21 = vmul.f32 %v85_v13, %v49_v20 }
  0x98   :  { %v54_v22 = vsel %vm53_vm5, %v85_v13, %v50_v21 }
  0x99   :  { %v56_v23 = vmul.f32 %v54_v22, %v26_v2 }
  0x9b   :  { %58 = vst [vmem:[#allocation5 + $0x8] sm:$0xff] %v56_v23 }
  0x9c   :  { %71 = dma.vmem_to_hbm [thread:$0]  %s64_s13, 256, %s66_s16, [#allocation4], %s139_s11, %s139_s11, %s140_s12  }
  0x9d   :  { %136 = dma.done.wait [#allocation4], 256  }
  0x9e   :  { %137 = vsyncadd [#allocation4], 4294967040 }
  0x9f   :  { %76 = vsyncpa [#allocation3], 1 }
  0xa0   :  { %77 = vsyncpa [#allocation4], 1 }

</bundles_post_ra>
